<compile_context>
chip_gen: v7x
topology: tpu7x:2x2x1
jax: 0.10.0
libtpu: 0.0.40
codegen_flags: <defaults>
</compile_context>

<pallas_src>
import jax
import jax.numpy as jnp
from jax.experimental import pallas as pl
from jax.experimental.pallas import tpu as pltpu


def gamma_kernel(w_ref, o_ref):
    # Elementwise sigmoid on the full (1, N) f32 tile; exp/recip go to the EUP.
    o_ref[...] = jax.nn.sigmoid(w_ref[...])


def gamma_forward(weights_2d: jax.Array) -> jax.Array:
    """Pallas equivalent of Gamma.forward(): sigmoid(weight).

    `weights_2d` is a (1, N) float32 array holding N gamma scalars
    (N == 1 for the original module; batching many Gamma modules into one
    lane-dense array amortizes the launch/DMA overhead N-fold).
    Returns a (1, N) float32 array.
    """
    assert weights_2d.ndim == 2 and weights_2d.shape[0] == 1, weights_2d.shape
    assert weights_2d.dtype == jnp.float32
    n = weights_2d.shape[1]
    return pl.pallas_call(
        gamma_kernel,
        out_shape=jax.ShapeDtypeStruct((1, n), jnp.float32),
        # Grid-less, single full-array block: block_shape == array shape, so the
        # (8,128) tiling constraint does not apply and there is no pipelining
        # machinery to pay for.
        in_specs=[pl.BlockSpec(memory_space=pltpu.VMEM)],
        out_specs=pl.BlockSpec(memory_space=pltpu.VMEM),
        cost_estimate=pl.CostEstimate(
            flops=0, transcendentals=n, bytes_accessed=8 * n
        ),
    )(weights_2d)


def gamma_forward_fused(weights_2d: jax.Array) -> jax.Array:
    """Recommended production path (review #1): no custom-call boundary, lets
    XLA fuse the sigmoid into whatever consumes gamma.  Semantics identical."""
    return jax.nn.sigmoid(weights_2d)


if __name__ == "__main__":
    # Deterministic parameter init, matching nn.Parameter(torch.tensor(1.0)).
    key = jax.random.PRNGKey(0)  # used only for the batched demo below
    weight = jnp.full((1, 1), 1.0, dtype=jnp.float32)  # (1,1) layout end-to-end

    # --- Original module semantics: one scalar gamma. ---
    gamma = gamma_forward(weight)
    jax.block_until_ready(gamma)
    expected = jax.nn.sigmoid(jnp.float32(1.0))
    assert jnp.allclose(gamma, expected, atol=1e-6), (gamma, expected)
    # Fused reference path matches the kernel.
    assert jnp.allclose(gamma_forward_fused(weight), gamma, atol=1e-6)

    # --- Batched path (review #3): many Gamma modules -> one lane-dense launch. ---
    n_gammas = 128  # full lane width -> unmasked vst
    weights_batched = jax.random.normal(key, (1, n_gammas), dtype=jnp.float32)
    gammas = gamma_forward(weights_batched)
    jax.block_until_ready(gammas)
    assert jnp.allclose(gammas, jax.nn.sigmoid(weights_batched), atol=1e-6)

    print("KERNEL_OK")
</pallas_src>

<mosaic_0001>
module attributes {stable_mosaic.version = 11 : i64} {
  func.func @gamma_kernel(%arg0: memref<1x1xf32, #tpu.memory_space<vmem>>, %arg1: memref<1x1xf32, #tpu.memory_space<vmem>>) attributes {dimension_semantics = [], scalar_prefetch = 0 : i64, scratch_operands = 0 : i64, tpu.core_type = #tpu.core_type<tc>} {
    %c0 = arith.constant 0 : index
    %c0_0 = arith.constant 0 : index
    %0 = vector.load %arg0[%c0, %c0_0] : memref<1x1xf32, #tpu.memory_space<vmem>>, vector<1x1xf32>
    %1 = arith.negf %0 : vector<1x1xf32>
    %2 = math.exp %1 : vector<1x1xf32>
    %cst = arith.constant 1.000000e+00 : f32
    %3 = vector.broadcast %cst : f32 to vector<1x1xf32>
    %4 = arith.addf %3, %2 : vector<1x1xf32>
    %5 = arith.divf %3, %4 : vector<1x1xf32>
    %c0_1 = arith.constant 0 : index
    %c0_2 = arith.constant 0 : index
    %6 = vector.load %arg1[%c0_1, %c0_2] : memref<1x1xf32, #tpu.memory_space<vmem>>, vector<1x1xf32>
    tpu.vector_store %arg1[%c0_1, %c0_2], %5 {strides = array<i32>} : memref<1x1xf32, #tpu.memory_space<vmem>>, vector<1x1xf32>,
    return
  }
}

</mosaic_0001>

<bundles_post_ra>
// kernel: tpu_custom_call.1
= control target key start
LH: loop header
LB: loop body
LE: loop exit
PB: predicated region body
PF: predicated region fallthrough
CT: control target
= control target key end

     0   :  { %s90_s0 = inlined_call_operand.<no memory space> [shape: f32[1,1], index: 0, kind: input, shape index: {}]   ;;  %s91_s1 = inlined_call_operand.hbm [shape: f32[1,1], index: 1, kind: output, shape index: {}]  }
   0x1   :  { %v6_v0 = vstv %s90_s0 }
   0x2   :  { %7 = vst [vmem:[#allocation2] sm:$0x1] %v6_v0 }
   0x9   :  { %v11_v1 = vld [vmem:[#allocation2] sm:$0x1] }
   0xa   :  { %8 = vsyncpa [#allocation4], 0  ;;  %v34_v2 = vmul.f32 -1.442695, %v11_v1  ;;  %s64_s8 = smov [#allocation3]   ;;  %vm18_vm0 = vcmask 0  }
   0xb   :  { %s26_s9 = sshll.u32 %s64_s8, 4  ;;  %s27_s9 = int_to_ptr.vmem [resolvable:$true] %s26_s9 }
   0xc   :  { %36 = vpow2.f32 %v34_v2  ;;  %s40_s10 = scalar_lea.vmem %s27_s9, 16  ;;  %s44_s11 = scalar_lea.vmem %s27_s9, 32 }
   0xd   :  { %p41_p0 = scmp.ne.s32.totalorder %s27_s9, %s40_s10  ;;  %p45_p1 = scmp.lt.s32.totalorder %s27_s9, %s27_s9 }
   0xe   :  { %p46_p2 = scmp.lt.s32.totalorder %s44_s11, %s40_s10 }
  0x10   :  { %p47_p3 = por %p46_p2, %p45_p1 }
  0x12   :  { %p48_p4 = pnand %p47_p3, %p41_p0 }
  0x16   :  { %v37_v3 = vpop.eup %36 }
  0x17   :  { %v15_v4 = vadd.f32 1.0, %v37_v3 }
  0x19   :  { %38 = vrcp.f32 %v15_v4 }
  0x23   :  { %v39_v5 = vpop.eup %38 }
  0x24   :  { %19 = vst.msk [vmem:[#allocation3] sm:$0x1] %vm18_vm0, %v39_v5 }
  0x25   :  { %51 = shalt.err (!%p48_p4)
}
  0x26   :  { %s52_s13 = scalar_lea.hbm %s91_s1, 16 }
  0x27   :  { %p53_p5 = scmp.ne.s32.totalorder %s91_s1, %s52_s13  ;;  %p56_p6 = scmp.lt.u32.totalorder %s52_s13, %s91_s1 }
  0x29   :  { %p58_p7 = pnand %p56_p6, %p53_p5 }
  0x2b   :  { %61 = shalt.err (!%p58_p7)
}
  0x2c   :  { %29 = dma.vmem_to_hbm [thread:$0]  %s27_s9, 16, %s91_s1, [#allocation4]  }
  0x2d   :  { %62 = dma.done.wait [#allocation4], 16  }
  0x2e   :  { %63 = vsyncadd [#allocation4], 4294967280 }
  0x2f   :  { %33 = vsyncpa [#allocation4], 1 }

</bundles_post_ra>
